<compile_context>
chip_gen: v6e
topology: v6e:2x2x1
jax: 0.10.0
libtpu: 0.0.40
codegen_flags: <defaults>
</compile_context>

<pallas_src>
import jax
import jax.numpy as jnp
from jax.experimental import pallas as pl
from jax.experimental.pallas import tpu as pltpu

LANE = 128                       # lane width (last dim of the flattened slab)
TARGET_BLOCK_BYTES = 4 * 1024 * 1024   # ~4 MiB per input block per step


def _sublane_granularity(dtype) -> int:
    # sub-32-bit dtypes pack along sublanes: f32 -> 8, bf16 -> 16, int8 -> 32
    itemsize = jnp.dtype(dtype).itemsize
    return 8 * max(1, 4 // itemsize)


def _make_kernel(*, tile_rows, fold, rows, inner_steps, pos_weight, needs_guard):
    """Build the reduction kernel. All arguments are static Python values."""

    def _fold_fn(v):
        # (tile_rows, LANE) f32 -> (fold, LANE) partial sums using only VPU
        # adds; fold is a multiple of 8 so the reshape is vreg-aligned (free)
        # and gives fold/8 independent accumulation chains.
        tr = v.shape[0]
        if tr % fold == 0 and tr >= fold:
            return v.reshape(tr // fold, fold, LANE).sum(axis=0)
        # Tiny-input fallback (rows < fold): reduce all rows into sublane 0.
        s = jnp.sum(v, axis=0, keepdims=True)                     # (1, LANE)
        sub = jax.lax.broadcasted_iota(jnp.int32, (fold, LANE), 0)
        return jnp.where(sub == 0, jnp.broadcast_to(s, (fold, LANE)), 0.0)

    def _accumulate(logits_ref, targets_ref, acc_ref, tile_start, masked):
        # Cast to f32 inside the kernel (inputs stay in native dtype in HBM).
        x = logits_ref[...].astype(jnp.float32)
        t = targets_ref[...].astype(jnp.float32)
        if pos_weight is not None:
            t = t * jnp.float32(pos_weight)   # in-kernel: no extra HBM pass
        if masked:
            # Out-of-range rows contain unspecified HBM data (possibly NaN).
            # Mask with selects: sigmoid(-inf) == 0 and t -> 0, so masked
            # elements contribute exactly 0 to both sums and NaNs cannot leak.
            row_ids = tile_start + jax.lax.broadcasted_iota(
                jnp.int32, (tile_rows, LANE), 0)
            valid = row_ids < rows
            x = jnp.where(valid, x, -jnp.inf)
            t = jnp.where(valid, t, 0.0)
        probs = jax.nn.sigmoid(x)
        acc_ref[0] += _fold_fn(probs * t)    # running sum(probs * targets)
        acc_ref[1] += _fold_fn(probs)        # running sum(probs) == TP + FP

    def kernel(logits_ref, targets_ref, out_ref, acc_ref):
        c = pl.program_id(0)     # parallel (per-TensorCore) axis
        i = pl.program_id(1)     # sequential reduction axis

        @pl.when(i == 0)
        def _():
            acc_ref[...] = jnp.zeros_like(acc_ref)

        # Unclamped global row start of this step's tile (the index_map clamps
        # the actual block index, but masking decisions use the unclamped one).
        tile_start = (c * inner_steps + i) * tile_rows

        if needs_guard:
            @pl.when(tile_start + tile_rows <= rows)
            def _():
                _accumulate(logits_ref, targets_ref, acc_ref, tile_start, False)

            @pl.when(jnp.logical_and(tile_start < rows,
                                     tile_start + tile_rows > rows))
            def _():
                _accumulate(logits_ref, targets_ref, acc_ref, tile_start, True)
            # tile_start >= rows: duplicated (clamped) tile -> contributes 0.
        else:
            _accumulate(logits_ref, targets_ref, acc_ref, tile_start, False)

        @pl.when(i == pl.num_programs(1) - 1)
        def _():
            out_ref[0] = acc_ref[...]   # per-core partial sums, reduced on host

    return kernel


def precision_loss2(logits, targets, epsilon=1e-8, pos_weight=None,
                    block_bytes=TARGET_BLOCK_BYTES):
    """Pallas TPU implementation of PrecisionLoss2.forward. Returns a scalar."""
    logits = jnp.asarray(logits)
    targets = jnp.asarray(targets)
    assert logits.shape == targets.shape, (logits.shape, targets.shape)
    pw = None if pos_weight is None else float(pos_weight)

    lf = logits.reshape(-1)
    tf = targets.reshape(-1)
    n = lf.shape[0]

    rows = n // LANE
    n_main = rows * LANE

    tp = jnp.float32(0.0)
    sp = jnp.float32(0.0)

    if rows > 0:
        if n_main != n:
            lm = lf[:n_main].reshape(rows, LANE)
            tm = tf[:n_main].reshape(rows, LANE)
        else:
            lm = lf.reshape(rows, LANE)
            tm = tf.reshape(rows, LANE)

        l_item = jnp.dtype(lm.dtype).itemsize
        t_item = jnp.dtype(tm.dtype).itemsize

        # Row tile: ~block_bytes for the widest input, aligned to the sublane
        # packing granularity of both dtypes; full-dim block for tiny inputs.
        tile_rows = max(8, block_bytes // (LANE * max(l_item, t_item)))
        g = max(_sublane_granularity(lm.dtype), _sublane_granularity(tm.dtype))
        tile_rows = (tile_rows // g) * g
        if rows < tile_rows:
            tile_rows = (rows // g) * g
            if tile_rows == 0:
                tile_rows = rows   # full array dim -> always a legal block

        num_tiles = -(-rows // tile_rows)
        ncores = 2 if num_tiles >= 2 else 1      # 2-way split for v7x megacore
        inner = -(-num_tiles // ncores)
        fold = next((f for f in (32, 16, 8) if tile_rows % f == 0), 8)
        needs_guard = (rows % tile_rows != 0) or (ncores * inner != num_tiles)

        def in_map(c, i):
            # Clamp so the (possibly duplicated) last step never addresses a
            # block whose start is past the array; the kernel skips/masks it.
            return (jnp.minimum(c * inner + i, num_tiles - 1), 0)

        kernel = _make_kernel(tile_rows=tile_rows, fold=fold, rows=rows,
                              inner_steps=inner, pos_weight=pw,
                              needs_guard=needs_guard)

        cost = pl.CostEstimate(
            flops=4 * n_main,
            transcendentals=n_main,
            bytes_accessed=n_main * (l_item + t_item),
        )

        partials = pl.pallas_call(
            kernel,
            out_shape=jax.ShapeDtypeStruct((ncores, 2, fold, LANE), jnp.float32),
            grid_spec=pltpu.PrefetchScalarGridSpec(
                num_scalar_prefetch=0,
                grid=(ncores, inner),
                in_specs=[
                    pl.BlockSpec((tile_rows, LANE), in_map),
                    pl.BlockSpec((tile_rows, LANE), in_map),
                ],
                out_specs=pl.BlockSpec((1, 2, fold, LANE),
                                       lambda c, i: (c, 0, 0, 0)),
                scratch_shapes=[pltpu.VMEM((2, fold, LANE), jnp.float32)],
            ),
            compiler_params=pltpu.CompilerParams(
                dimension_semantics=("parallel", "arbitrary"),
                vmem_limit_bytes=32 * 1024 * 1024,
            ),
            cost_estimate=cost,
        )(lm, tm)

        tp = jnp.sum(partials[:, 0])
        sp = jnp.sum(partials[:, 1])

    if n_main != n:
        # <128-element lane tail: tiny plain-XLA reduction, no padding copies.
        lt = lf[n_main:].astype(jnp.float32)
        tt = tf[n_main:].astype(jnp.float32)
        if pw is not None:
            tt = tt * jnp.float32(pw)
        p_tail = jax.nn.sigmoid(lt)
        tp = tp + jnp.sum(p_tail * tt)
        sp = sp + jnp.sum(p_tail)

    return 1.0 - tp / (sp + jnp.float32(epsilon))


def precision_loss2_ref(logits, targets, epsilon=1e-8, pos_weight=None):
    probs = jax.nn.sigmoid(jnp.asarray(logits, jnp.float32))
    t = jnp.asarray(targets, jnp.float32)
    if pos_weight is not None:
        t = t * pos_weight
    tp = jnp.sum(probs * t)
    fp = jnp.sum(probs * (1.0 - t))
    return 1.0 - tp / (tp + fp + epsilon)


if __name__ == "__main__":
    key = jax.random.PRNGKey(0)
    keys = jax.random.split(key, 10)

    tests = [
        # (shape, logits dtype, targets dtype, pos_weight, block_bytes)
        ((2, 4, 16, 16), jnp.float32, jnp.float32, None, TARGET_BLOCK_BYTES),
        # small block_bytes forces multi-tile grid + 2-way split + ragged tile
        ((2, 4, 256, 130), jnp.float32, jnp.float32, None, 128 * 1024),
        # lane tail (<128 elems) + pos_weight + ragged split
        ((3, 5, 7, 11), jnp.float32, jnp.float32, 2.0, TARGET_BLOCK_BYTES),
        # tiny input (< 128 elems): pure wrapper tail path, no kernel call
        ((2, 3), jnp.float32, jnp.float32, None, TARGET_BLOCK_BYTES),
        # bf16 logits AND bf16 targets, cast in-kernel
        ((2, 4, 32, 64), jnp.bfloat16, jnp.bfloat16, None, TARGET_BLOCK_BYTES),
    ]

    for idx, (shape, ldt, tdt, pw, bb) in enumerate(tests):
        k1, k2 = keys[2 * idx], keys[2 * idx + 1]
        logits = jax.random.normal(k1, shape, dtype=jnp.float32).astype(ldt)
        targets = (jax.random.uniform(k2, shape) > 0.5).astype(tdt)

        out = jax.block_until_ready(
            precision_loss2(logits, targets, pos_weight=pw, block_bytes=bb))
        ref = precision_loss2_ref(logits, targets, pos_weight=pw)
        assert jnp.allclose(out, ref, rtol=1e-5, atol=1e-5), (shape, out, ref)

    print("KERNEL_OK")
</pallas_src>

<mosaic_0001>
module attributes {stable_mosaic.version = 11 : i64} {
  func.func @kernel(%arg0: i32, %arg1: i32, %arg2: memref<16x128xf32, #tpu.memory_space<vmem>>, %arg3: memref<16x128xf32, #tpu.memory_space<vmem>>, %arg4: memref<1x2x16x128xf32, #tpu.memory_space<vmem>>, %arg5: memref<2x16x128xf32, #tpu.memory_space<vmem>>) attributes {dimension_semantics = [#tpu.dimension_semantics<parallel>, #tpu.dimension_semantics<arbitrary>], iteration_bounds = array<i64: 1, 1>, scalar_prefetch = 0 : i64, scratch_operands = 1 : i64, tpu.core_type = #tpu.core_type<tc>, window_params = [{transform_indices = @transform_0, window_bounds = array<i64: 16, 128>}, {transform_indices = @transform_1, window_bounds = array<i64: 16, 128>}, {transform_indices = @transform_2, window_bounds = array<i64: 1, 2, 16, 128>}]} {
    %c0_i32 = arith.constant 0 : i32
    %0 = arith.cmpi eq, %arg1, %c0_i32 : i32
    %1 = arith.extui %0 : i1 to i32
    %c0_i32_0 = arith.constant 0 : i32
    %2 = arith.cmpi ne, %1, %c0_i32_0 : i32
    scf.if %2 {
      %cst_19 = arith.constant 0.000000e+00 : f32
      %30 = vector.broadcast %cst_19 : f32 to vector<2x16x128xf32>
      %c0_20 = arith.constant 0 : index
      %c0_21 = arith.constant 0 : index
      %c0_22 = arith.constant 0 : index
      %31 = vector.load %arg5[%c0_20, %c0_21, %c0_22] : memref<2x16x128xf32, #tpu.memory_space<vmem>>, vector<2x16x128xf32>
      tpu.vector_store %arg5[%c0_20, %c0_21, %c0_22], %30 {strides = array<i32>} : memref<2x16x128xf32, #tpu.memory_space<vmem>>, vector<2x16x128xf32>,
    } else {
    }
    %c0 = arith.constant 0 : index
    %c0_1 = arith.constant 0 : index
    %3 = vector.load %arg2[%c0, %c0_1] : memref<16x128xf32, #tpu.memory_space<vmem>>, vector<16x128xf32>
    %c0_2 = arith.constant 0 : index
    %c0_3 = arith.constant 0 : index
    %4 = vector.load %arg3[%c0_2, %c0_3] : memref<16x128xf32, #tpu.memory_space<vmem>>, vector<16x128xf32>
    %5 = arith.negf %3 : vector<16x128xf32>
    %6 = math.exp %5 : vector<16x128xf32>
    %cst = arith.constant 1.000000e+00 : f32
    %7 = vector.broadcast %cst : f32 to vector<16x128xf32>
    %8 = arith.addf %7, %6 : vector<16x128xf32>
    %9 = arith.divf %7, %8 : vector<16x128xf32>
    %c0_4 = arith.constant 0 : index
    %c0_5 = arith.constant 0 : index
    %c0_6 = arith.constant 0 : index
    %10 = vector.load %arg5[%c0_4, %c0_5, %c0_6] : memref<2x16x128xf32, #tpu.memory_space<vmem>>, vector<1x16x128xf32>
    %11 = vector.shape_cast %10 : vector<1x16x128xf32> to vector<16x128xf32>
    %12 = arith.mulf %9, %4 : vector<16x128xf32>
    %13 = vector.shape_cast %12 : vector<16x128xf32> to vector<1x16x128xf32>
    %cst_7 = arith.constant dense<0.000000e+00> : vector<16x128xf32>
    %14 = vector.multi_reduction <add>, %13, %cst_7 [0] : vector<1x16x128xf32> to vector<16x128xf32>
    %15 = arith.addf %11, %14 : vector<16x128xf32>
    %c0_8 = arith.constant 0 : index
    %c0_9 = arith.constant 0 : index
    %c0_10 = arith.constant 0 : index
    %16 = vector.load %arg5[%c0_8, %c0_9, %c0_10] : memref<2x16x128xf32, #tpu.memory_space<vmem>>, vector<1x16x128xf32>
    %17 = vector.shape_cast %16 : vector<1x16x128xf32> to vector<16x128xf32>
    %18 = vector.shape_cast %15 : vector<16x128xf32> to vector<1x16x128xf32>
    tpu.vector_store %arg5[%c0_8, %c0_9, %c0_10], %18 {strides = array<i32>} : memref<2x16x128xf32, #tpu.memory_space<vmem>>, vector<1x16x128xf32>,
    %c1 = arith.constant 1 : index
    %c0_11 = arith.constant 0 : index
    %c0_12 = arith.constant 0 : index
    %19 = vector.load %arg5[%c1, %c0_11, %c0_12] : memref<2x16x128xf32, #tpu.memory_space<vmem>>, vector<1x16x128xf32>
    %20 = vector.shape_cast %19 : vector<1x16x128xf32> to vector<16x128xf32>
    %21 = vector.shape_cast %9 : vector<16x128xf32> to vector<1x16x128xf32>
    %cst_13 = arith.constant dense<0.000000e+00> : vector<16x128xf32>
    %22 = vector.multi_reduction <add>, %21, %cst_13 [0] : vector<1x16x128xf32> to vector<16x128xf32>
    %23 = arith.addf %20, %22 : vector<16x128xf32>
    %c1_14 = arith.constant 1 : index
    %c0_15 = arith.constant 0 : index
    %c0_16 = arith.constant 0 : index
    %24 = vector.load %arg5[%c1_14, %c0_15, %c0_16] : memref<2x16x128xf32, #tpu.memory_space<vmem>>, vector<1x16x128xf32>
    %25 = vector.shape_cast %24 : vector<1x16x128xf32> to vector<16x128xf32>
    %26 = vector.shape_cast %23 : vector<16x128xf32> to vector<1x16x128xf32>
    tpu.vector_store %arg5[%c1_14, %c0_15, %c0_16], %26 {strides = array<i32>} : memref<2x16x128xf32, #tpu.memory_space<vmem>>, vector<1x16x128xf32>,
    %c0_i32_17 = arith.constant 0 : i32
    %27 = arith.cmpi eq, %arg1, %c0_i32_17 : i32
    %28 = arith.extui %27 : i1 to i32
    %c0_i32_18 = arith.constant 0 : i32
    %29 = arith.cmpi ne, %28, %c0_i32_18 : i32
    scf.if %29 {
      %c0_19 = arith.constant 0 : index
      %c0_20 = arith.constant 0 : index
      %c0_21 = arith.constant 0 : index
      %30 = vector.load %arg5[%c0_19, %c0_20, %c0_21] : memref<2x16x128xf32, #tpu.memory_space<vmem>>, vector<2x16x128xf32>
      %c0_22 = arith.constant 0 : index
      %c0_23 = arith.constant 0 : index
      %c0_24 = arith.constant 0 : index
      %c0_25 = arith.constant 0 : index
      %31 = vector.load %arg4[%c0_22, %c0_23, %c0_24, %c0_25] : memref<1x2x16x128xf32, #tpu.memory_space<vmem>>, vector<1x2x16x128xf32>
      %32 = vector.shape_cast %31 : vector<1x2x16x128xf32> to vector<2x16x128xf32>
      %33 = vector.shape_cast %30 : vector<2x16x128xf32> to vector<1x2x16x128xf32>
      tpu.vector_store %arg4[%c0_22, %c0_23, %c0_24, %c0_25], %33 {strides = array<i32>} : memref<1x2x16x128xf32, #tpu.memory_space<vmem>>, vector<1x2x16x128xf32>,
    } else {
    }
    return
  }
  func.func @transform_0(%arg0: i32, %arg1: i32) -> (i32, i32) {
    %c1_i32 = arith.constant 1 : i32
    %0 = arith.muli %arg0, %c1_i32 : i32
    %1 = arith.addi %0, %arg1 : i32
    %c0_i32 = arith.constant 0 : i32
    %2 = arith.minsi %1, %c0_i32 : i32
    %c0_i32_0 = arith.constant 0 : i32
    %c0_i32_1 = arith.constant 0 : i32
    return %2, %c0_i32_0 : i32, i32
  }
  func.func @transform_1(%arg0: i32, %arg1: i32) -> (i32, i32) {
    %c1_i32 = arith.constant 1 : i32
    %0 = arith.muli %arg0, %c1_i32 : i32
    %1 = arith.addi %0, %arg1 : i32
    %c0_i32 = arith.constant 0 : i32
    %2 = arith.minsi %1, %c0_i32 : i32
    %c0_i32_0 = arith.constant 0 : i32
    %c0_i32_1 = arith.constant 0 : i32
    return %2, %c0_i32_0 : i32, i32
  }
  func.func @transform_2(%arg0: i32, %arg1: i32) -> (i32, i32, i32, i32) {
    %c0_i32 = arith.constant 0 : i32
    %c0_i32_0 = arith.constant 0 : i32
    %c0_i32_1 = arith.constant 0 : i32
    %c0_i32_2 = arith.constant 0 : i32
    return %arg0, %c0_i32, %c0_i32_0, %c0_i32_1 : i32, i32, i32, i32
  }
}

</mosaic_0001>

<bundles_post_ra>
// kernel: tpu_custom_call.1
= control target key start
LH: loop header
LB: loop body
LE: loop exit
PB: predicated region body
PF: predicated region fallthrough
CT: control target
= control target key end

     0   :  { %7 = vsyncpa [#allocation4], 0  ;;  %s255_s0 = inlined_call_operand.hbm [shape: f32[16,128], index: 0, kind: input, shape index: {}]   ;;  %s256_s1 = inlined_call_operand.hbm [shape: f32[16,128], index: 1, kind: input, shape index: {}]   ;;  %s257_s2 = inlined_call_operand.hbm [shape: f32[1,2,16,128], index: 2, kind: output, shape index: {}]  }
   0x1   :  { %8 = vsyncpa [#allocation7], 0 }
   0x2   :  { %9 = vsyncpa [#allocation5], 0  ;;  %s217_s9 = smov [#allocation3]  }
   0x3   :  { %s21_s10 = sshll.u32 %s217_s9, 4  ;;  %s22_s10 = int_to_ptr.vmem [resolvable:$true] %s21_s10 }
   0x4   :  { %s159_s11 = scalar_lea.vmem %s22_s10, 256  ;;  %p164_p1 = scmp.lt.s32.totalorder %s22_s10, %s22_s10 }
   0x5   :  { %p160_p0 = scmp.ne.s32.totalorder %s22_s10, %s159_s11  ;;  %p165_p2 = scmp.lt.s32.totalorder %s159_s11, %s159_s11 }
   0x7   :  { %p166_p3 = por %p165_p2, %p164_p1 }
   0x9   :  { %p167_p4 = pnand %p166_p3, %p160_p0 }
   0xb   :  { %170 = shalt.err (!%p167_p4)
}
   0xc   :  { %s218_s12 = smov 128   ;;  %s219_s13 = smov 8  }
   0xd   :  { %27 = dma.hbm_to_vmem [thread:$0]  %s255_s0, 256, %s22_s10, [#allocation4], %s218_s12, %s218_s12, %s219_s13  }
   0xe   :  { %s220_s16 = smov [#allocation6]  }
   0xf   :  { %s39_s17 = sshll.u32 %s220_s16, 4  ;;  %s40_s17 = int_to_ptr.vmem [resolvable:$true] %s39_s17 }
  0x10   :  { %s179_s18 = scalar_lea.vmem %s40_s17, 256  ;;  %p184_p6 = scmp.lt.s32.totalorder %s40_s17, %s40_s17 }
  0x11   :  { %p180_p5 = scmp.ne.s32.totalorder %s40_s17, %s179_s18  ;;  %p185_p7 = scmp.lt.s32.totalorder %s179_s18, %s179_s18 }
  0x13   :  { %p186_p8 = por %p185_p7, %p184_p6 }
  0x15   :  { %p187_p9 = pnand %p186_p8, %p180_p5 }
  0x17   :  { %190 = shalt.err (!%p187_p9)
}
  0x18   :  { %45 = dma.hbm_to_vmem [thread:$0]  %s256_s1, 256, %s40_s17, [#allocation7], %s218_s12, %s218_s12, %s219_s13  }
  0x19   :  { %211 = dma.done.wait [#allocation4], 256  }
  0x1a   :  { %212 = vsyncadd [#allocation4], 4294967040 }
  0x1b   :  { %213 = dma.done.wait [#allocation7], 256  }
  0x1c   :  { %214 = vsyncadd [#allocation7], 4294967040  ;;  %v68_v0 = vld [vmem:[#allocation3] sm:$0xff]  ;;  %v69_v1 = vld [vmem:[#allocation3 + $0x8] sm:$0xff]  ;;  %s221_s0 = smov [#allocation8]  }
  0x1d   :  { %v136_v2 = vmul.f32 -1.442695, %v68_v0  ;;  %v137_v3 = vmul.f32 -1.442695, %v69_v1  ;;  %v70_v8 = vld [vmem:[#allocation6] sm:$0xff]  ;;  %v71_v9 = vld [vmem:[#allocation6 + $0x8] sm:$0xff] }
  0x1e   :  { %s119_s1 = sshll.u32 %s221_s0, 4  ;;  %s120_s1 = int_to_ptr.vmem [resolvable:$true] %s119_s1 }
  0x1f   :  { %143 = vpow2.f32 %v136_v2  ;;  %s191_s21 = scalar_lea.vmem %s120_s1, 512  ;;  %p196_p11 = scmp.lt.s32.totalorder %s120_s1, %s120_s1 }
  0x20   :  { %145 = vpow2.f32 %v137_v3  ;;  %p192_p10 = scmp.ne.s32.totalorder %s120_s1, %s191_s21  ;;  %p197_p12 = scmp.lt.s32.totalorder %s191_s21, %s191_s21 }
  0x22   :  { %p198_p13 = por %p197_p12, %p196_p11 }
  0x24   :  { %p199_p0 = pnand %p198_p13, %p192_p10 }
  0x2c   :  { %v144_v4 = vpop.eup %143 }
  0x2d   :  { %v146_v5 = vpop.eup %145  ;;  %v78_v6 = vadd.f32 1.0, %v144_v4 }
  0x2e   :  { %v79_v7 = vadd.f32 1.0, %v146_v5 }
  0x2f   :  { %147 = vrcp.f32 %v78_v6 }
  0x30   :  { %149 = vrcp.f32 %v79_v7 }
  0x3c   :  { %v148_v10 = vpop.eup %147 }
  0x3d   :  { %v150_v11 = vpop.eup %149  ;;  %v86_v12 = vmul.f32 %v148_v10, %v70_v8  ;;  %112 = vst [vmem:[#allocation8 + $0x10] sm:$0xff] %v148_v10 }
  0x3e   :  { %v87_v13 = vmul.f32 %v150_v11, %v71_v9  ;;  %113 = vst [vmem:[#allocation8 + $0x18] sm:$0xff] %v150_v11 }
  0x3f   :  { %110 = vst [vmem:[#allocation8] sm:$0xff] %v86_v12 }
  0x40   :  { %111 = vst [vmem:[#allocation8 + $0x8] sm:$0xff] %v87_v13 }
  0x41   :  { %202 = shalt.err (!%p199_p0)
}
  0x42   :  { %125 = dma.vmem_to_hbm [thread:$0]  %s120_s1, 512, %s257_s2, [#allocation5], %s218_s12, %s218_s12, %s219_s13  }
  0x43   :  { %215 = dma.done.wait [#allocation5], 512  }
  0x44   :  { %216 = vsyncadd [#allocation5], 4294966784 }
  0x45   :  { %129 = vsyncpa [#allocation4], 1 }
  0x46   :  { %130 = vsyncpa [#allocation7], 1 }
  0x47   :  { %131 = vsyncpa [#allocation5], 1 }

</bundles_post_ra>
